<compile_context>
chip_gen: v6e
topology: v6e:2x2x1
jax: 0.10.0
libtpu: 0.0.40
codegen_flags: <defaults>
</compile_context>

<pallas_src>
import jax
import jax.numpy as jnp
from jax import lax
from jax.experimental import pallas as pl
from jax.experimental.pallas import tpu as pltpu


_VMEM_LIMIT_BYTES = 48 * 1024 * 1024  # > 16/32 MiB scoped defaults, < v7x 64 MiB physical


# ------------------------------ small helpers ------------------------------ #

def _fold_bn(gamma, beta, mean, var, eps=1e-5):
    # NOTE: eps=1e-5 is the PyTorch BatchNorm2d default; adjust if the source
    # model uses a different value (silent divergence otherwise).
    scale = gamma / jnp.sqrt(var + eps)
    return scale, beta - mean * scale


def _conv_w_to_matmul(w):
    """PyTorch conv weight (Cout, Cin, kh, kw) -> (kh*kw*Cin, Cout)."""
    cout, cin, kh, kw = w.shape
    return jnp.transpose(w, (2, 3, 1, 0)).reshape(kh * kw * cin, cout)


def _block_diag(w, reps):
    k, c = w.shape
    out = jnp.zeros((reps * k, reps * c), w.dtype)
    for r in range(reps):
        out = out.at[r * k:(r + 1) * k, r * c:(r + 1) * c].set(w)
    return out


def _stem2b_fused_weight(w2bm, cs, c1):
    """Rearrange the stem2b 3x3/s2 weight for the fused 4-neighbour-window dot.

    Input lanes per output pixel are [self | up | left | upleft] windows, each
    window being the 4 stem2a pixels [q00|q01|q10|q11] of one 2x2 block.
    """
    def tap(di, dj):
        r = (di * 3 + dj) * cs
        return w2bm[r:r + cs]

    z = jnp.zeros((cs, c1), w2bm.dtype)
    w_self = jnp.concatenate([tap(1, 1), tap(1, 2), tap(2, 1), tap(2, 2)], axis=0)
    w_up = jnp.concatenate([z, z, tap(0, 1), tap(0, 2)], axis=0)
    w_left = jnp.concatenate([z, tap(1, 0), z, tap(2, 0)], axis=0)
    w_upleft = jnp.concatenate([z, z, z, tap(0, 0)], axis=0)
    return jnp.concatenate([w_self, w_up, w_left, w_upleft], axis=0)  # (16*cs, c1)


# ------------------------------ tiling helpers ------------------------------ #

def _pick_rows(m, row_bytes, *, max_rows=4096, max_bytes=4 << 20, min_steps=2):
    """Rows per grid step: multiple of 8, byte-bounded, >=min_steps steps."""
    if m <= 8:
        return m, 1
    tm = min(max_rows, max(8, max_bytes // max(row_bytes, 1)))
    cap = max(8, (pl.cdiv(m, min_steps) // 8) * 8)  # keep >=2 steps for v7x megacore
    tm = max(8, min((tm // 8) * 8, cap))
    if tm >= m:
        return m, 1
    return tm, pl.cdiv(m, tm)


def _pick_h2_rows(n, h2, w2, row_bytes, max_bytes=4 << 20):
    """h2-rows per stage-2 tile: divides H2, 8-row-aligned tiles, byte-bounded,
    prefers >=2 total grid steps (v7x megacore)."""
    ks = [k for k in range(1, h2 + 1) if h2 % k == 0 and (k * w2) % 8 == 0]
    assert ks, "need an H2 divisor k with k*W2 a multiple of 8"
    fit = [k for k in ks if k * w2 * row_bytes <= max_bytes] or [min(ks)]
    multi = [k for k in fit if n * (h2 // k) >= 2]
    return max(multi) if multi else max(fit)


# ----------------------- stage 1: stem1 + pool + stem2a --------------------- #

def stage1(cols, w1_bd, s1, b1, w2a_bd, s2a, b2a):
    """Fused stem1(3x3/s2)+BN/ReLU + MaxPool2d(2,2) + stem2a(1x1)+BN/ReLU.

    `cols` rows hold the im2col patches of one 2x2 block of stem1 pixels, so
    the pool is a lane-slice max and stem1's activation never hits HBM.  The
    single output packs [stem2a(4 px) | pooled branch1 | zero pad] into a
    128-wide lane-dense row (unmasked stores).
    """
    m, k4 = cols.shape
    c1_4 = w1_bd.shape[1]
    c1 = c1_4 // 4
    c4s = w2a_bd.shape[1]
    pad = (-(c4s + c1)) % 128
    cw = c4s + c1 + pad

    def kernel(cols_ref, w1_ref, s1_ref, b1_ref, w2a_ref, s2a_ref, b2a_ref, o_ref):
        t = jnp.dot(cols_ref[...], w1_ref[...], preferred_element_type=jnp.float32)
        t = jnp.maximum(t * s1_ref[...] + b1_ref[...], 0.0)           # (tm, 4*C1) f32
        # MaxPool2d(2,2): the 4 pixels of each pool window sit in 4 lane slices.
        pool = jnp.maximum(jnp.maximum(t[:, :c1], t[:, c1:2 * c1]),
                           jnp.maximum(t[:, 2 * c1:3 * c1], t[:, 3 * c1:]))
        a2 = jnp.dot(t.astype(w2a_ref.dtype), w2a_ref[...],
                     preferred_element_type=jnp.float32)
        a2 = jnp.maximum(a2 * s2a_ref[...] + b2a_ref[...], 0.0)       # (tm, 4*Cs)
        parts = [a2.astype(o_ref.dtype), pool.astype(o_ref.dtype)]
        if pad:
            parts.append(jnp.zeros((t.shape[0], pad), o_ref.dtype))
        o_ref[...] = jnp.concatenate(parts, axis=-1)

    row_bytes = 2 * (k4 + cw) + 4 * (c1_4 + c4s)
    tm, nt = _pick_rows(m, row_bytes)
    row = lambda i: (i, 0)
    rep = lambda i: (0, 0)
    return pl.pallas_call(
        kernel,
        out_shape=jax.ShapeDtypeStruct((m, cw), jnp.bfloat16),
        grid=(nt,),
        in_specs=[pl.BlockSpec((tm, k4), row),
                  pl.BlockSpec((k4, c1_4), rep),
                  pl.BlockSpec((1, c1_4), rep),
                  pl.BlockSpec((1, c1_4), rep),
                  pl.BlockSpec((c1_4, c4s), rep),
                  pl.BlockSpec((1, c4s), rep),
                  pl.BlockSpec((1, c4s), rep)],
        out_specs=pl.BlockSpec((tm, cw), row),
        compiler_params=pltpu.CompilerParams(
            dimension_semantics=("parallel",),
            vmem_limit_bytes=_VMEM_LIMIT_BYTES),
    )(cols, w1_bd, s1, b1, w2a_bd, s2a, b2a)


# --------------------------- stage 2: stem2b + stem3 ------------------------ #

def stage2(comb, n, h2, w2, c4s, c1, w2b, s2b, b2b, w3, s3, b3):
    """Fused stem2b(3x3/s2)+BN/ReLU + stem3(1x1 on channel concat)+BN/ReLU.

    Consumes the stage-1 output directly (stem2a features of each 2x2 block in
    lanes [0, 4*Cs), pooled branch1 in lanes [4*Cs, 4*Cs+C1)).  The stem2b
    im2col is done in-kernel by gathering the self/up/left/up-left 2x2 blocks
    through a small VMEM scratch plus a one-h2-row halo BlockSpec, so no
    expanded patch matrix ever hits HBM.  stem3 is a single concat-free dot.
    """
    m, cw = comb.shape
    assert m == n * h2 * w2
    row_bytes = 2 * (2 * cw + c1) + 4 * (4 * c4s + 2 * c1)
    k = _pick_h2_rows(n, h2, w2, row_bytes)
    n_tiles = h2 // k
    kw2 = k * w2
    comb3d = comb.reshape(n * h2, w2, cw)

    def kernel(a_ref, halo_ref, w2b_ref, s2b_ref, bb_ref, w3_ref, s3_ref, b3_ref,
               o_ref, scr):
        full = a_ref[...]                              # (kw2, cw)
        s_blk = full[:, :c4s]                          # stem2a of the self 2x2 block
        b1 = full[:, c4s:c4s + c1]                     # pooled branch1, row-aligned
        halo = halo_ref[0][:, :c4s]                    # previous h2-row of blocks
        halo = jnp.where(pl.program_id(1) == 0, jnp.zeros_like(halo), halo)
        # Scratch rows: [0]=zero pad, [1..w2]=previous h2-row, [w2+1..]=this tile.
        scr[pl.ds(0, 1), :] = jnp.zeros((1, c4s), scr.dtype)
        scr[pl.ds(1, w2), :] = halo
        scr[pl.ds(1 + w2, kw2), :] = s_blk
        up = scr[pl.ds(1, kw2), :]                     # block one output row above
        left = scr[pl.ds(w2, kw2), :]                  # block one output col left
        upleft = scr[pl.ds(0, kw2), :]
        col0 = (lax.broadcasted_iota(jnp.int32, (kw2, 1), 0) % w2) == 0
        left = jnp.where(col0, jnp.zeros_like(left), left)        # zero pad at w2==0
        upleft = jnp.where(col0, jnp.zeros_like(upleft), upleft)
        x = jnp.concatenate([s_blk, up, left, upleft], axis=-1)   # (kw2, 16*Cs)
        b2 = jnp.dot(x, w2b_ref[...], preferred_element_type=jnp.float32)
        b2 = jnp.maximum(b2 * s2b_ref[...] + bb_ref[...], 0.0)
        # stem3: concat([branch1, branch2], C) folded into one 2*C1-wide dot.
        cat = jnp.concatenate([b1, b2.astype(w3_ref.dtype)], axis=-1)
        y = jnp.dot(cat, w3_ref[...], preferred_element_type=jnp.float32)
        y = jnp.maximum(y * s3_ref[...] + b3_ref[...], 0.0)
        o_ref[...] = y.astype(o_ref.dtype)

    amap = lambda b, i: (b * n_tiles + i, 0)
    hmap = lambda b, i: (jnp.maximum(b * h2 + i * k - 1, 0), 0, 0)
    rep = lambda b, i: (0, 0)
    return pl.pallas_call(
        kernel,
        out_shape=jax.ShapeDtypeStruct((m, c1), jnp.bfloat16),
        grid=(n, n_tiles),
        in_specs=[pl.BlockSpec((kw2, cw), amap),
                  pl.BlockSpec((1, w2, cw), hmap),
                  pl.BlockSpec((4 * c4s, c1), rep),
                  pl.BlockSpec((1, c1), rep),
                  pl.BlockSpec((1, c1), rep),
                  pl.BlockSpec((2 * c1, c1), rep),
                  pl.BlockSpec((1, c1), rep),
                  pl.BlockSpec((1, c1), rep)],
        out_specs=pl.BlockSpec((kw2, c1), amap),
        scratch_shapes=[pltpu.VMEM((1 + w2 + kw2, c4s), jnp.bfloat16)],
        compiler_params=pltpu.CompilerParams(
            dimension_semantics=("parallel", "parallel"),
            vmem_limit_bytes=_VMEM_LIMIT_BYTES),
    )(comb, comb3d, w2b, s2b, b2b, w3, s3, b3)


# ------------------------------- glue (JAX) -------------------------------- #

def _im2col_3x3_s2_packed(x):
    """im2col for a 3x3/s2/p1 conv, packed per 2x2 block of output pixels.

    x: (N, H, W, C) -> (N*H2*W2, 4*9*C); the four patches of one pool window
    sit side by side along lanes, in (q00, q01, q10, q11) order.
    """
    # TODO(synk): move this patch extraction into the stage-1 kernel (halo'd
    # input row blocks) so the 9x-expanded patch matrix never hits HBM.
    n, h, w, c = x.shape
    h1, w1 = (h - 1) // 2 + 1, (w - 1) // 2 + 1
    # Even stem1 spatial dims required (same implicit constraint as the module).
    assert h1 % 2 == 0 and w1 % 2 == 0, (h1, w1)
    xp = jnp.pad(x, ((0, 0), (1, 1), (1, 1), (0, 0)))
    taps = [xp[:, di:di + 2 * h1:2, dj:dj + 2 * w1:2, :]
            for di in range(3) for dj in range(3)]
    pat = jnp.concatenate(taps, axis=-1)            # (N, H1, W1, 9*C), (di,dj,c) order
    h2, w2 = h1 // 2, w1 // 2
    k1 = 9 * c
    pat = pat.reshape(n, h2, 2, w2, 2, k1).transpose(0, 1, 3, 2, 4, 5)
    return pat.reshape(n * h2 * w2, 4 * k1), (h1, w1)


def init_params(key, num_input_channels, num_init_features):
    num_stem = num_init_features // 2
    ks = jax.random.split(key, 8)

    def conv_w(k, cout, cin, ksize):
        fan_in = cin * ksize * ksize
        return (jax.random.normal(k, (cout, cin, ksize, ksize), jnp.float32)
                * (2.0 / fan_in) ** 0.5)

    def bn_params(k, c):
        k1, k2, k3, k4 = jax.random.split(k, 4)
        gamma = 1.0 + 0.1 * jax.random.normal(k1, (c,), jnp.float32)
        beta = 0.1 * jax.random.normal(k2, (c,), jnp.float32)
        mean = 0.1 * jax.random.normal(k3, (c,), jnp.float32)
        var = jax.random.uniform(k4, (c,), jnp.float32, minval=0.5, maxval=1.5)
        return _fold_bn(gamma, beta, mean, var)

    return {
        "stem1_w": conv_w(ks[0], num_init_features, num_input_channels, 3),
        "stem1_bn": bn_params(ks[1], num_init_features),
        "stem2a_w": conv_w(ks[2], num_stem, num_init_features, 1),
        "stem2a_bn": bn_params(ks[3], num_stem),
        "stem2b_w": conv_w(ks[4], num_init_features, num_stem, 3),
        "stem2b_bn": bn_params(ks[5], num_init_features),
        "stem3_w": conv_w(ks[6], num_init_features, 2 * num_init_features, 1),
        "stem3_bn": bn_params(ks[7], num_init_features),
    }


def prepare_params(raw):
    """Raw PyTorch-layout params -> kernel layouts (block-diag / fused weights)."""
    bf = jnp.bfloat16
    w1m = _conv_w_to_matmul(raw["stem1_w"])
    w2am = _conv_w_to_matmul(raw["stem2a_w"])
    w2bm = _conv_w_to_matmul(raw["stem2b_w"])
    w3m = _conv_w_to_matmul(raw["stem3_w"])
    c1 = w1m.shape[1]
    cs = w2am.shape[1]
    s1, b1 = raw["stem1_bn"]
    s2a, b2a = raw["stem2a_bn"]
    s2b, b2b = raw["stem2b_bn"]
    s3, b3 = raw["stem3_bn"]
    return {
        "w1_bd": _block_diag(w1m, 4).astype(bf),
        "s1": jnp.tile(s1, 4)[None, :], "b1": jnp.tile(b1, 4)[None, :],
        "w2a_bd": _block_diag(w2am, 4).astype(bf),
        "s2a": jnp.tile(s2a, 4)[None, :], "b2a": jnp.tile(b2a, 4)[None, :],
        "w2b": _stem2b_fused_weight(w2bm, cs, c1).astype(bf),
        "s2b": s2b[None, :], "b2b": b2b[None, :],
        "w3": w3m.astype(bf),
        "s3": s3[None, :], "b3": b3[None, :],
    }


@jax.jit
def stem_block_forward(x_nchw, prep):
    x = jnp.transpose(x_nchw, (0, 2, 3, 1)).astype(jnp.bfloat16)
    n = x.shape[0]
    cols, (h1, w1) = _im2col_3x3_s2_packed(x)
    h2, w2 = h1 // 2, w1 // 2
    c1 = prep["w3"].shape[1]
    c4s = prep["w2a_bd"].shape[1]
    comb = stage1(cols, prep["w1_bd"], prep["s1"], prep["b1"],
                  prep["w2a_bd"], prep["s2a"], prep["b2a"])
    y = stage2(comb, n, h2, w2, c4s, c1, prep["w2b"], prep["s2b"], prep["b2b"],
               prep["w3"], prep["s3"], prep["b3"])
    y = y.reshape(n, h2, w2, c1)
    # Keep the module's NCHW/f32 contract; the kernels emit bf16, so the XLA
    # transpose moves half the bytes (skip it entirely if NHWC/bf16 is OK).
    return jnp.transpose(y, (0, 3, 1, 2)).astype(jnp.float32)


def stem_block_reference(x_nchw, raw):
    """Pure-XLA reference with the same bf16 cast points as the Pallas path."""
    def conv(v, w, stride, padding):
        w_hwio = jnp.transpose(w, (2, 3, 1, 0)).astype(jnp.bfloat16)
        return lax.conv_general_dilated(
            v, w_hwio, (stride, stride), [(padding, padding)] * 2,
            dimension_numbers=("NHWC", "HWIO", "NHWC"),
            preferred_element_type=jnp.float32)

    def bn_relu(v, sb):
        s, b = sb
        return jnp.maximum(v * s + b, 0.0)

    x = jnp.transpose(x_nchw, (0, 2, 3, 1)).astype(jnp.bfloat16)
    out1 = bn_relu(conv(x, raw["stem1_w"], 2, 1), raw["stem1_bn"])
    a2 = bn_relu(conv(out1.astype(jnp.bfloat16), raw["stem2a_w"], 1, 0), raw["stem2a_bn"])
    b2 = bn_relu(conv(a2.astype(jnp.bfloat16), raw["stem2b_w"], 2, 1), raw["stem2b_bn"])
    n, h1, w1, c1 = out1.shape
    pool = out1.reshape(n, h1 // 2, 2, w1 // 2, 2, c1).max(axis=(2, 4))
    cat = jnp.concatenate([pool.astype(jnp.bfloat16), b2.astype(jnp.bfloat16)], axis=-1)
    y = bn_relu(conv(cat, raw["stem3_w"], 1, 0), raw["stem3_bn"])
    return jnp.transpose(y, (0, 3, 1, 2))


# ---------------------------------- main ----------------------------------- #

if __name__ == "__main__":
    num_input_channels = 4
    num_init_features = 32
    n, h, w = 2, 16, 16

    key = jax.random.PRNGKey(0)
    kx, kp = jax.random.split(key)
    x = jax.random.normal(kx, (n, num_input_channels, h, w), jnp.float32)
    raw = init_params(kp, num_input_channels, num_init_features)
    prep = prepare_params(raw)

    out = jax.block_until_ready(stem_block_forward(x, prep))

    expected_shape = (n, num_init_features, h // 4, w // 4)
    assert out.shape == expected_shape, (out.shape, expected_shape)
    assert out.dtype == jnp.float32
    assert bool(jnp.all(jnp.isfinite(out)))

    # Numerical check against a pure-XLA reference (bf16 weights/activations,
    # f32 accumulation), generous tolerance for bf16 rounding.
    ref = jax.block_until_ready(stem_block_reference(x, raw))
    max_err = float(jnp.max(jnp.abs(out - ref)))
    assert bool(jnp.allclose(out, ref, rtol=5e-2, atol=5e-2)), max_err

    print("KERNEL_OK")
</pallas_src>

<mosaic_0001>
module attributes {stable_mosaic.version = 11 : i64} {
  func.func @kernel(%arg0: i32, %arg1: memref<16x144xbf16, #tpu.memory_space<vmem>>, %arg2: memref<144x128xbf16, #tpu.memory_space<vmem>>, %arg3: memref<1x128xf32, #tpu.memory_space<vmem>>, %arg4: memref<1x128xf32, #tpu.memory_space<vmem>>, %arg5: memref<128x64xbf16, #tpu.memory_space<vmem>>, %arg6: memref<1x64xf32, #tpu.memory_space<vmem>>, %arg7: memref<1x64xf32, #tpu.memory_space<vmem>>, %arg8: memref<16x128xbf16, #tpu.memory_space<vmem>>) attributes {dimension_semantics = [#tpu.dimension_semantics<parallel>], iteration_bounds = array<i64: 2>, scalar_prefetch = 0 : i64, scratch_operands = 0 : i64, tpu.core_type = #tpu.core_type<tc>, window_params = [{transform_indices = @transform_0, window_bounds = array<i64: 16, 144>}, {pipeline_mode = #tpu.pipeline_mode<synchronous>, transform_indices = @transform_1, window_bounds = array<i64: 144, 128>}, {pipeline_mode = #tpu.pipeline_mode<synchronous>, transform_indices = @transform_2, window_bounds = array<i64: 1, 128>}, {pipeline_mode = #tpu.pipeline_mode<synchronous>, transform_indices = @transform_3, window_bounds = array<i64: 1, 128>}, {pipeline_mode = #tpu.pipeline_mode<synchronous>, transform_indices = @transform_4, window_bounds = array<i64: 128, 64>}, {pipeline_mode = #tpu.pipeline_mode<synchronous>, transform_indices = @transform_5, window_bounds = array<i64: 1, 64>}, {pipeline_mode = #tpu.pipeline_mode<synchronous>, transform_indices = @transform_6, window_bounds = array<i64: 1, 64>}, {transform_indices = @transform_7, window_bounds = array<i64: 16, 128>}]} {
    %c0 = arith.constant 0 : index
    %c0_0 = arith.constant 0 : index
    %0 = vector.load %arg1[%c0, %c0_0] : memref<16x144xbf16, #tpu.memory_space<vmem>>, vector<16x144xbf16>
    %c0_1 = arith.constant 0 : index
    %c0_2 = arith.constant 0 : index
    %1 = vector.load %arg2[%c0_1, %c0_2] : memref<144x128xbf16, #tpu.memory_space<vmem>>, vector<144x128xbf16>
    %cst = arith.constant dense<0.000000e+00> : vector<16x128xf32>
    %2 = tpu.matmul %0, %1, %cst {dimension_numbers = #tpu.dot_dimension_numbers<[1], [0], [0], [1], [0, 0, 1, 1], [], []>} : vector<16x144xbf16>, vector<144x128xbf16>, vector<16x128xf32> -> vector<16x128xf32>
    %c0_3 = arith.constant 0 : index
    %c0_4 = arith.constant 0 : index
    %3 = vector.load %arg3[%c0_3, %c0_4] : memref<1x128xf32, #tpu.memory_space<vmem>>, vector<1x128xf32>
    %4 = vector.broadcast %3 : vector<1x128xf32> to vector<16x128xf32>
    %5 = arith.mulf %2, %4 : vector<16x128xf32>
    %c0_5 = arith.constant 0 : index
    %c0_6 = arith.constant 0 : index
    %6 = vector.load %arg4[%c0_5, %c0_6] : memref<1x128xf32, #tpu.memory_space<vmem>>, vector<1x128xf32>
    %7 = vector.broadcast %6 : vector<1x128xf32> to vector<16x128xf32>
    %8 = arith.addf %5, %7 : vector<16x128xf32>
    %cst_7 = arith.constant 0.000000e+00 : f32
    %9 = vector.broadcast %cst_7 : f32 to vector<16x128xf32>
    %10 = arith.maximumf %8, %9 : vector<16x128xf32>
    %11 = vector.extract_strided_slice %10 {offsets = [0, 0], sizes = [16, 32], strides = [1, 1]} : vector<16x128xf32> to vector<16x32xf32>
    %12 = vector.extract_strided_slice %10 {offsets = [0, 32], sizes = [16, 32], strides = [1, 1]} : vector<16x128xf32> to vector<16x32xf32>
    %13 = arith.maximumf %11, %12 : vector<16x32xf32>
    %14 = vector.extract_strided_slice %10 {offsets = [0, 64], sizes = [16, 32], strides = [1, 1]} : vector<16x128xf32> to vector<16x32xf32>
    %15 = vector.extract_strided_slice %10 {offsets = [0, 96], sizes = [16, 32], strides = [1, 1]} : vector<16x128xf32> to vector<16x32xf32>
    %16 = arith.maximumf %14, %15 : vector<16x32xf32>
    %17 = arith.maximumf %13, %16 : vector<16x32xf32>
    %18 = arith.truncf %10 : vector<16x128xf32> to vector<16x128xbf16>
    %c0_8 = arith.constant 0 : index
    %c0_9 = arith.constant 0 : index
    %19 = vector.load %arg5[%c0_8, %c0_9] : memref<128x64xbf16, #tpu.memory_space<vmem>>, vector<128x64xbf16>
    %cst_10 = arith.constant dense<0.000000e+00> : vector<16x64xf32>
    %20 = tpu.matmul %18, %19, %cst_10 {dimension_numbers = #tpu.dot_dimension_numbers<[1], [0], [0], [1], [0, 0, 1, 1], [], []>} : vector<16x128xbf16>, vector<128x64xbf16>, vector<16x64xf32> -> vector<16x64xf32>
    %c0_11 = arith.constant 0 : index
    %c0_12 = arith.constant 0 : index
    %21 = vector.load %arg6[%c0_11, %c0_12] : memref<1x64xf32, #tpu.memory_space<vmem>>, vector<1x64xf32>
    %22 = vector.broadcast %21 : vector<1x64xf32> to vector<16x64xf32>
    %23 = arith.mulf %20, %22 : vector<16x64xf32>
    %c0_13 = arith.constant 0 : index
    %c0_14 = arith.constant 0 : index
    %24 = vector.load %arg7[%c0_13, %c0_14] : memref<1x64xf32, #tpu.memory_space<vmem>>, vector<1x64xf32>
    %25 = vector.broadcast %24 : vector<1x64xf32> to vector<16x64xf32>
    %26 = arith.addf %23, %25 : vector<16x64xf32>
    %cst_15 = arith.constant 0.000000e+00 : f32
    %27 = vector.broadcast %cst_15 : f32 to vector<16x64xf32>
    %28 = arith.maximumf %26, %27 : vector<16x64xf32>
    %29 = arith.truncf %28 : vector<16x64xf32> to vector<16x64xbf16>
    %30 = arith.truncf %17 : vector<16x32xf32> to vector<16x32xbf16>
    %cst_16 = arith.constant 0.000000e+00 : bf16
    %31 = vector.broadcast %cst_16 : bf16 to vector<16x32xbf16>
    %32 = tpu.concatenate %29, %30, %31 in 1 : vector<16x64xbf16>, vector<16x32xbf16>, vector<16x32xbf16> -> vector<16x128xbf16>
    %c0_17 = arith.constant 0 : index
    %c0_18 = arith.constant 0 : index
    %33 = vector.load %arg8[%c0_17, %c0_18] : memref<16x128xbf16, #tpu.memory_space<vmem>>, vector<16x128xbf16>
    tpu.vector_store %arg8[%c0_17, %c0_18], %32 {strides = array<i32>} : memref<16x128xbf16, #tpu.memory_space<vmem>>, vector<16x128xbf16>,
    return
  }
  func.func @transform_0(%arg0: i32) -> (i32, i32) {
    %c0_i32 = arith.constant 0 : i32
    %c0_i32_0 = arith.constant 0 : i32
    return %arg0, %c0_i32 : i32, i32
  }
  func.func @transform_1(%arg0: i32) -> (i32, i32) {
    %c0_i32 = arith.constant 0 : i32
    %c0_i32_0 = arith.constant 0 : i32
    %c0_i32_1 = arith.constant 0 : i32
    return %c0_i32, %c0_i32_0 : i32, i32
  }
  func.func @transform_2(%arg0: i32) -> (i32, i32) {
    %c0_i32 = arith.constant 0 : i32
    %c0_i32_0 = arith.constant 0 : i32
    %c0_i32_1 = arith.constant 0 : i32
    return %c0_i32, %c0_i32_0 : i32, i32
  }
  func.func @transform_3(%arg0: i32) -> (i32, i32) {
    %c0_i32 = arith.constant 0 : i32
    %c0_i32_0 = arith.constant 0 : i32
    %c0_i32_1 = arith.constant 0 : i32
    return %c0_i32, %c0_i32_0 : i32, i32
  }
  func.func @transform_4(%arg0: i32) -> (i32, i32) {
    %c0_i32 = arith.constant 0 : i32
    %c0_i32_0 = arith.constant 0 : i32
    %c0_i32_1 = arith.constant 0 : i32
    return %c0_i32, %c0_i32_0 : i32, i32
  }
  func.func @transform_5(%arg0: i32) -> (i32, i32) {
    %c0_i32 = arith.constant 0 : i32
    %c0_i32_0 = arith.constant 0 : i32
    %c0_i32_1 = arith.constant 0 : i32
    return %c0_i32, %c0_i32_0 : i32, i32
  }
  func.func @transform_6(%arg0: i32) -> (i32, i32) {
    %c0_i32 = arith.constant 0 : i32
    %c0_i32_0 = arith.constant 0 : i32
    %c0_i32_1 = arith.constant 0 : i32
    return %c0_i32, %c0_i32_0 : i32, i32
  }
  func.func @transform_7(%arg0: i32) -> (i32, i32) {
    %c0_i32 = arith.constant 0 : i32
    %c0_i32_0 = arith.constant 0 : i32
    return %arg0, %c0_i32 : i32, i32
  }
}

module attributes {stable_mosaic.version = 11 : i64} {
  func.func @kernel(%arg0: i32, %arg1: i32, %arg2: memref<16x128xbf16, #tpu.memory_space<vmem>>, %arg3: memref<1x4x128xbf16, #tpu.memory_space<vmem>>, %arg4: memref<256x32xbf16, #tpu.memory_space<vmem>>, %arg5: memref<1x32xf32, #tpu.memory_space<vmem>>, %arg6: memref<1x32xf32, #tpu.memory_space<vmem>>, %arg7: memref<64x32xbf16, #tpu.memory_space<vmem>>, %arg8: memref<1x32xf32, #tpu.memory_space<vmem>>, %arg9: memref<1x32xf32, #tpu.memory_space<vmem>>, %arg10: memref<16x32xbf16, #tpu.memory_space<vmem>>, %arg11: memref<21x64xbf16, #tpu.memory_space<vmem>>) attributes {dimension_semantics = [#tpu.dimension_semantics<parallel>, #tpu.dimension_semantics<parallel>], iteration_bounds = array<i64: 2, 1>, scalar_prefetch = 0 : i64, scratch_operands = 1 : i64, tpu.core_type = #tpu.core_type<tc>, window_params = [{transform_indices = @transform_0, window_bounds = array<i64: 16, 128>}, {transform_indices = @transform_1, window_bounds = array<i64: 1, 4, 128>}, {pipeline_mode = #tpu.pipeline_mode<synchronous>, transform_indices = @transform_2, window_bounds = array<i64: 256, 32>}, {pipeline_mode = #tpu.pipeline_mode<synchronous>, transform_indices = @transform_3, window_bounds = array<i64: 1, 32>}, {pipeline_mode = #tpu.pipeline_mode<synchronous>, transform_indices = @transform_4, window_bounds = array<i64: 1, 32>}, {pipeline_mode = #tpu.pipeline_mode<synchronous>, transform_indices = @transform_5, window_bounds = array<i64: 64, 32>}, {pipeline_mode = #tpu.pipeline_mode<synchronous>, transform_indices = @transform_6, window_bounds = array<i64: 1, 32>}, {pipeline_mode = #tpu.pipeline_mode<synchronous>, transform_indices = @transform_7, window_bounds = array<i64: 1, 32>}, {transform_indices = @transform_8, window_bounds = array<i64: 16, 32>}]} {
    %c0 = arith.constant 0 : index
    %c0_0 = arith.constant 0 : index
    %0 = vector.load %arg2[%c0, %c0_0] : memref<16x128xbf16, #tpu.memory_space<vmem>>, vector<16x128xbf16>
    %1 = vector.extract_strided_slice %0 {offsets = [0, 0], sizes = [16, 64], strides = [1, 1]} : vector<16x128xbf16> to vector<16x64xbf16>
    %2 = vector.extract_strided_slice %0 {offsets = [0, 64], sizes = [16, 32], strides = [1, 1]} : vector<16x128xbf16> to vector<16x32xbf16>
    %c0_1 = arith.constant 0 : index
    %c0_2 = arith.constant 0 : index
    %c0_3 = arith.constant 0 : index
    %3 = vector.load %arg3[%c0_1, %c0_2, %c0_3] : memref<1x4x128xbf16, #tpu.memory_space<vmem>>, vector<1x4x128xbf16>
    %4 = vector.shape_cast %3 : vector<1x4x128xbf16> to vector<4x128xbf16>
    %5 = vector.extract_strided_slice %4 {offsets = [0, 0], sizes = [4, 64], strides = [1, 1]} : vector<4x128xbf16> to vector<4x64xbf16>
    %c0_i32 = arith.constant 0 : i32
    %6 = arith.cmpi eq, %arg1, %c0_i32 : i32
    %cst = arith.constant 0.000000e+00 : bf16
    %7 = vector.broadcast %cst : bf16 to vector<4x64xbf16>
    %8 = arith.select %6, %7, %5 : vector<4x64xbf16>
    %cst_4 = arith.constant 0.000000e+00 : bf16
    %9 = vector.broadcast %cst_4 : bf16 to vector<1x64xbf16>
    %c0_5 = arith.constant 0 : index
    %c0_6 = arith.constant 0 : index
    %10 = vector.load %arg11[%c0_5, %c0_6] : memref<21x64xbf16, #tpu.memory_space<vmem>>, vector<1x64xbf16>
    tpu.vector_store %arg11[%c0_5, %c0_6], %9 {strides = array<i32>} : memref<21x64xbf16, #tpu.memory_space<vmem>>, vector<1x64xbf16>,
    %c1 = arith.constant 1 : index
    %c0_7 = arith.constant 0 : index
    %11 = vector.load %arg11[%c1, %c0_7] : memref<21x64xbf16, #tpu.memory_space<vmem>>, vector<4x64xbf16>
    tpu.vector_store %arg11[%c1, %c0_7], %8 {strides = array<i32>} : memref<21x64xbf16, #tpu.memory_space<vmem>>, vector<4x64xbf16>,
    %c5 = arith.constant 5 : index
    %c0_8 = arith.constant 0 : index
    %12 = vector.load %arg11[%c5, %c0_8] : memref<21x64xbf16, #tpu.memory_space<vmem>>, vector<16x64xbf16>
    tpu.vector_store %arg11[%c5, %c0_8], %1 {strides = array<i32>} : memref<21x64xbf16, #tpu.memory_space<vmem>>, vector<16x64xbf16>,
    %c1_9 = arith.constant 1 : index
    %c0_10 = arith.constant 0 : index
    %13 = vector.load %arg11[%c1_9, %c0_10] : memref<21x64xbf16, #tpu.memory_space<vmem>>, vector<16x64xbf16>
    %c4 = arith.constant 4 : index
    %c0_11 = arith.constant 0 : index
    %14 = vector.load %arg11[%c4, %c0_11] : memref<21x64xbf16, #tpu.memory_space<vmem>>, vector<16x64xbf16>
    %c0_12 = arith.constant 0 : index
    %c0_13 = arith.constant 0 : index
    %15 = vector.load %arg11[%c0_12, %c0_13] : memref<21x64xbf16, #tpu.memory_space<vmem>>, vector<16x64xbf16>
    %16 = tpu.iota {dimensions = array<i32: 0>} : vector<16x1xi32>
    %c4_i32 = arith.constant 4 : i32
    %c0_i32_14 = arith.constant 0 : i32
    %17 = arith.cmpi eq, %c4_i32, %c0_i32_14 : i32
    %c1_i32 = arith.constant 1 : i32
    %18 = arith.select %17, %c1_i32, %c4_i32 : i32
    %19 = vector.broadcast %18 : i32 to vector<16x1xi32>
    %20 = arith.remsi %16, %19 : vector<16x1xi32>
    %c0_i32_15 = arith.constant 0 : i32
    %21 = vector.broadcast %c0_i32_15 : i32 to vector<16x1xi32>
    %22 = arith.cmpi ne, %20, %21 : vector<16x1xi32>
    %c0_i32_16 = arith.constant 0 : i32
    %23 = vector.broadcast %c0_i32_16 : i32 to vector<16x1xi32>
    %24 = arith.cmpi slt, %20, %23 : vector<16x1xi32>
    %c0_i32_17 = arith.constant 0 : i32
    %25 = arith.cmpi slt, %18, %c0_i32_17 : i32
    %26 = vector.broadcast %25 : i1 to vector<16x1xi1>
    %27 = vector.broadcast %26 : vector<16x1xi1> to vector<16x1xi1>
    %28 = arith.xori %24, %27 : vector<16x1xi1>
    %29 = arith.andi %28, %22 : vector<16x1xi1>
    %30 = vector.broadcast %18 : i32 to vector<16x1xi32>
    %31 = arith.addi %20, %30 : vector<16x1xi32>
    %32 = arith.select %29, %31, %20 : vector<16x1xi1>, vector<16x1xi32>
    %c0_i32_18 = arith.constant 0 : i32
    %33 = vector.broadcast %c0_i32_18 : i32 to vector<16x1xi32>
    %34 = arith.cmpi eq, %32, %33 : vector<16x1xi32>
    %cst_19 = arith.constant 0.000000e+00 : bf16
    %35 = vector.broadcast %cst_19 : bf16 to vector<16x64xbf16>
    %36 = vector.shape_cast %34 : vector<16x1xi1> to vector<16x1xi1>
    %37 = vector.broadcast %36 : vector<16x1xi1> to vector<16x64xi1>
    %38 = arith.select %37, %35, %14 : vector<16x64xi1>, vector<16x64xbf16>
    %cst_20 = arith.constant 0.000000e+00 : bf16
    %39 = vector.broadcast %cst_20 : bf16 to vector<16x64xbf16>
    %40 = vector.shape_cast %34 : vector<16x1xi1> to vector<16x1xi1>
    %41 = vector.broadcast %40 : vector<16x1xi1> to vector<16x64xi1>
    %42 = arith.select %41, %39, %15 : vector<16x64xi1>, vector<16x64xbf16>
    %43 = tpu.concatenate %1, %13, %38, %42 in 1 : vector<16x64xbf16>, vector<16x64xbf16>, vector<16x64xbf16>, vector<16x64xbf16> -> vector<16x256xbf16>
    %c0_21 = arith.constant 0 : index
    %c0_22 = arith.constant 0 : index
    %44 = vector.load %arg4[%c0_21, %c0_22] : memref<256x32xbf16, #tpu.memory_space<vmem>>, vector<256x32xbf16>
    %cst_23 = arith.constant dense<0.000000e+00> : vector<16x32xf32>
    %45 = tpu.matmul %43, %44, %cst_23 {dimension_numbers = #tpu.dot_dimension_numbers<[1], [0], [0], [1], [0, 0, 1, 1], [], []>} : vector<16x256xbf16>, vector<256x32xbf16>, vector<16x32xf32> -> vector<16x32xf32>
    %c0_24 = arith.constant 0 : index
    %c0_25 = arith.constant 0 : index
    %46 = vector.load %arg5[%c0_24, %c0_25] : memref<1x32xf32, #tpu.memory_space<vmem>>, vector<1x32xf32>
    %47 = vector.broadcast %46 : vector<1x32xf32> to vector<16x32xf32>
    %48 = arith.mulf %45, %47 : vector<16x32xf32>
    %c0_26 = arith.constant 0 : index
    %c0_27 = arith.constant 0 : index
    %49 = vector.load %arg6[%c0_26, %c0_27] : memref<1x32xf32, #tpu.memory_space<vmem>>, vector<1x32xf32>
    %50 = vector.broadcast %49 : vector<1x32xf32> to vector<16x32xf32>
    %51 = arith.addf %48, %50 : vector<16x32xf32>
    %cst_28 = arith.constant 0.000000e+00 : f32
    %52 = vector.broadcast %cst_28 : f32 to vector<16x32xf32>
    %53 = arith.maximumf %51, %52 : vector<16x32xf32>
    %54 = arith.truncf %53 : vector<16x32xf32> to vector<16x32xbf16>
    %55 = tpu.concatenate %2, %54 in 1 : vector<16x32xbf16>, vector<16x32xbf16> -> vector<16x64xbf16>
    %c0_29 = arith.constant 0 : index
    %c0_30 = arith.constant 0 : index
    %56 = vector.load %arg7[%c0_29, %c0_30] : memref<64x32xbf16, #tpu.memory_space<vmem>>, vector<64x32xbf16>
    %cst_31 = arith.constant dense<0.000000e+00> : vector<16x32xf32>
    %57 = tpu.matmul %55, %56, %cst_31 {dimension_numbers = #tpu.dot_dimension_numbers<[1], [0], [0], [1], [0, 0, 1, 1], [], []>} : vector<16x64xbf16>, vector<64x32xbf16>, vector<16x32xf32> -> vector<16x32xf32>
    %c0_32 = arith.constant 0 : index
    %c0_33 = arith.constant 0 : index
    %58 = vector.load %arg8[%c0_32, %c0_33] : memref<1x32xf32, #tpu.memory_space<vmem>>, vector<1x32xf32>
    %59 = vector.broadcast %58 : vector<1x32xf32> to vector<16x32xf32>
    %60 = arith.mulf %57, %59 : vector<16x32xf32>
    %c0_34 = arith.constant 0 : index
    %c0_35 = arith.constant 0 : index
    %61 = vector.load %arg9[%c0_34, %c0_35] : memref<1x32xf32, #tpu.memory_space<vmem>>, vector<1x32xf32>
    %62 = vector.broadcast %61 : vector<1x32xf32> to vector<16x32xf32>
    %63 = arith.addf %60, %62 : vector<16x32xf32>
    %cst_36 = arith.constant 0.000000e+00 : f32
    %64 = vector.broadcast %cst_36 : f32 to vector<16x32xf32>
    %65 = arith.maximumf %63, %64 : vector<16x32xf32>
    %66 = arith.truncf %65 : vector<16x32xf32> to vector<16x32xbf16>
    %c0_37 = arith.constant 0 : index
    %c0_38 = arith.constant 0 : index
    %67 = vector.load %arg10[%c0_37, %c0_38] : memref<16x32xbf16, #tpu.memory_space<vmem>>, vector<16x32xbf16>
    tpu.vector_store %arg10[%c0_37, %c0_38], %66 {strides = array<i32>} : memref<16x32xbf16, #tpu.memory_space<vmem>>, vector<16x32xbf16>,
    return
  }
  func.func @transform_0(%arg0: i32, %arg1: i32) -> (i32, i32) {
    %c1_i32 = arith.constant 1 : i32
    %0 = arith.muli %arg0, %c1_i32 : i32
    %1 = arith.addi %0, %arg1 : i32
    %c0_i32 = arith.constant 0 : i32
    %c0_i32_0 = arith.constant 0 : i32
    return %1, %c0_i32 : i32, i32
  }
  func.func @transform_1(%arg0: i32, %arg1: i32) -> (i32, i32, i32) {
    %c4_i32 = arith.constant 4 : i32
    %0 = arith.muli %arg0, %c4_i32 : i32
    %c4_i32_0 = arith.constant 4 : i32
    %1 = arith.muli %arg1, %c4_i32_0 : i32
    %2 = arith.addi %0, %1 : i32
    %c1_i32 = arith.constant 1 : i32
    %3 = arith.subi %2, %c1_i32 : i32
    %c0_i32 = arith.constant 0 : i32
    %4 = arith.maxsi %3, %c0_i32 : i32
    %c0_i32_1 = arith.constant 0 : i32
    %c0_i32_2 = arith.constant 0 : i32
    %c0_i32_3 = arith.constant 0 : i32
    return %4, %c0_i32_1, %c0_i32_2 : i32, i32, i32
  }
  func.func @transform_2(%arg0: i32, %arg1: i32) -> (i32, i32) {
    %c0_i32 = arith.constant 0 : i32
    %c0_i32_0 = arith.constant 0 : i32
    %c0_i32_1 = arith.constant 0 : i32
    return %c0_i32, %c0_i32_0 : i32, i32
  }
  func.func @transform_3(%arg0: i32, %arg1: i32) -> (i32, i32) {
    %c0_i32 = arith.constant 0 : i32
    %c0_i32_0 = arith.constant 0 : i32
    %c0_i32_1 = arith.constant 0 : i32
    return %c0_i32, %c0_i32_0 : i32, i32
  }
  func.func @transform_4(%arg0: i32, %arg1: i32) -> (i32, i32) {
    %c0_i32 = arith.constant 0 : i32
    %c0_i32_0 = arith.constant 0 : i32
    %c0_i32_1 = arith.constant 0 : i32
    return %c0_i32, %c0_i32_0 : i32, i32
  }
  func.func @transform_5(%arg0: i32, %arg1: i32) -> (i32, i32) {
    %c0_i32 = arith.constant 0 : i32
    %c0_i32_0 = arith.constant 0 : i32
    %c0_i32_1 = arith.constant 0 : i32
    return %c0_i32, %c0_i32_0 : i32, i32
  }
  func.func @transform_6(%arg0: i32, %arg1: i32) -> (i32, i32) {
    %c0_i32 = arith.constant 0 : i32
    %c0_i32_0 = arith.constant 0 : i32
    %c0_i32_1 = arith.constant 0 : i32
    return %c0_i32, %c0_i32_0 : i32, i32
  }
  func.func @transform_7(%arg0: i32, %arg1: i32) -> (i32, i32) {
    %c0_i32 = arith.constant 0 : i32
    %c0_i32_0 = arith.constant 0 : i32
    %c0_i32_1 = arith.constant 0 : i32
    return %c0_i32, %c0_i32_0 : i32, i32
  }
  func.func @transform_8(%arg0: i32, %arg1: i32) -> (i32, i32) {
    %c1_i32 = arith.constant 1 : i32
    %0 = arith.muli %arg0, %c1_i32 : i32
    %1 = arith.addi %0, %arg1 : i32
    %c0_i32 = arith.constant 0 : i32
    %c0_i32_0 = arith.constant 0 : i32
    return %1, %c0_i32 : i32, i32
  }
}

</mosaic_0001>

<bundles_post_ra>
// kernel: stem_block_forward.2
= control target key start
LH: loop header
LB: loop body
LE: loop exit
PB: predicated region body
PF: predicated region fallthrough
CT: control target
= control target key end

     0   :  { %s821_s24 = smov 0   ;;  %s909_s0 = inlined_call_operand.vmem [shape: bf16[32,144], index: 0, kind: input, shape index: {}]   ;;  %s910_s1 = inlined_call_operand.vmem [shape: bf16[144,128], index: 1, kind: input, shape index: {}]   ;;  %s911_s2 = inlined_call_operand.vmem [shape: f32[1,128], index: 2, kind: input, shape index: {}]   ;;  %s912_s3 = inlined_call_operand.vmem [shape: f32[1,128], index: 3, kind: input, shape index: {}]   ;;  %s913_s4 = inlined_call_operand.vmem [shape: bf16[128,64], index: 4, kind: input, shape index: {}]   ;;  %s914_s5 = inlined_call_operand.vmem [shape: f32[1,64], index: 5, kind: input, shape index: {}]   ;;  %s915_s6 = inlined_call_operand.vmem [shape: f32[1,64], index: 6, kind: input, shape index: {}]   ;;  %s916_s7 = inlined_call_operand.vmem [shape: bf16[32,128], index: 7, kind: output, shape index: {}]  }
   0x1 LB: > { %s657_s25 = sadd.s32 4294967295, %s774_s24   ;;  %p661_p0 = scmp.ge.s32.totalorder %s774_s24, 1  ;;  %s774_s24 = sphi %s821_s24, %s17_s24  }
   0x2   : > { %p239_p1 = scmp.lt.s32.totalorder %s774_s24, 3 }
   0x4   : > { %p240_p2 = pnand %p661_p0, %p239_p1 }
   0x5   : > { %s662_s28 = sshll.u32 (!%p240_p2), %s657_s25, 1  ;;  %s779_s26 = smov (!%p240_p2), 96  }
   0x6   : > { %243 = sbr.rel (%p240_p2) target bundleno = 615 (0x267), region = 48  ;;  %p273_p3 = scmp.lt.s32.totalorder (!%p240_p2), %s662_s28, 3 }
   0x7   : > { %s780_s27 = smov (!%p240_p2), 64  }
   0xb   : > { %v748_v0 = vld [vmem:[%s910_s1 + $0x38] sm:$0xff]   ;;  %v776_v1 = vmov 0   ;;  %v749_v2 = vld [vmem:[%s910_s1 + $0x30] sm:$0xff]   ;;  %s918_s28 = smov (!%p273_p3, %s662_s28), 3  ;;  %v750_v3 = vld [vmem:[%s910_s1 + $0x28] sm:$0xff]   ;;  %v777_v4 = vmov 0.0  }
   0xc   : > { %373 = vmatprep.subr.bf16.mxu0 %v776_v1  ;;  %s695_s10 = sshll.u32 %s918_s28, 3  ;;  %705 = vmatprep.subr.bf16.mxu1 %v777_v4  ;;  %v751_v5 = vld [vmem:[%s910_s1 + $0x20] sm:$0xff]   ;;  %vm369_vm0 = vcmask 130048   ;;  %v760_v7 = vld [vmem:[%s913_s4 + $0x38] sm:$0xff]   ;;  %v761_v8 = vld [vmem:[%s913_s4 + $0x30] sm:$0xff]   ;;  %vm778_vm1 = vmmov 0  }
   0xd   : > { %374 = vmatpush1.bf16.msra.mxu0 %v748_v0  ;;  %s844_s13 = scalar_lea.vmem %s909_s0, %s695_s10  ;;  %706 = vmatpush3.bf16.msra.mxu1 %v760_v7  ;;  %v752_v9 = vld [vmem:[%s910_s1 + $0x18] sm:$0xff]   ;;  %v762_v10 = vld [vmem:[%s913_s4 + $0x28] sm:$0xff]   ;;  %v753_v11 = vld [vmem:[%s910_s1 + $0x10] sm:$0xff]   ;;  %vm585_vm2 = vcmask 523264   ;;  %s666_s10 = sshll.u32 %s918_s28, 2  ;;  %vm589_vm3 = vcmask 785408  }
   0xe   : > { %375 = vmatprep.subr.bf16.mxu0 %v776_v1  ;;  %v759_v6 = vld [vmem:[%s844_s13 + $0x4] ss:$8 sps:$4 sm:$0xff]   ;;  %707 = vmatprep.subr.bf16.mxu1 %v777_v4  ;;  %v764_v14 = vld [vmem:[%s913_s4 + $0x18] sm:$0xff]   ;;  %v757_v17 = vld [vmem:[%s844_s13] ss:$8 sps:$4 sm:$0xff]   ;;  %s283_s14 = scalar_lea.vmem %s916_s7, %s666_s10 }
   0xf   : > { %678 = vmatprep.mubr.msk.bf16.mxu0 %vm369_vm0, %v759_v6  ;;  %v763_v12 = vld [vmem:[%s913_s4 + $0x20] sm:$0xff]   ;;  %v754_v13 = vld [vmem:[%s910_s1 + $0x8] sm:$0xff]   ;;  %v765_v18 = vld [vmem:[%s913_s4 + $0x10] sm:$0xff]   ;;  %721 = vmatprep.mubr.msk.bf16.mxu1 %vm778_vm1, %v777_v4 }
  0x10   : > { %v755_v15 = vld [vmem:[%s910_s1] sm:$0xff]   ;;  %v766_v19 = vld [vmem:[%s913_s4 + $0x8] sm:$0xff]  }
  0x11   : > { %376 = vmatpush1.bf16.msra.mxu0 %v749_v2  ;;  %708 = vmatpush3.bf16.msra.mxu1 %v761_v8  ;;  %v756_v16 = vld [vmem:[%s910_s1 + $0x40] sm:$0xff]  }
  0x12   : > { %377 = vmatprep.subr.bf16.mxu0 %v776_v1  ;;  %709 = vmatprep.subr.bf16.mxu1 %v777_v4  ;;  %v767_v20 = vld [vmem:[%s913_s4] sm:$0xff]  }
  0x13   : > { %v679_v21 = vld [vmem:[%s911_s2] ss:$0 sm:$0xff] }
  0x14   : > { %v680_v24 = vld [vmem:[%s912_s3] ss:$0 sm:$0xff] }
  0x15   : > { %378 = vmatpush1.bf16.msra.mxu0 %v750_v3  ;;  %710 = vmatpush3.bf16.msra.mxu1 %v762_v10  ;;  %v689_v41 = vld [vmem:[%s914_s5] ss:$0 sm:$0xff] }
  0x16   : > { %379 = vmatprep.subr.bf16.mxu0 %v776_v1  ;;  %711 = vmatprep.subr.bf16.mxu1 %v777_v4  ;;  %v690_v44 = vld [vmem:[%s915_s6] ss:$0 sm:$0xff] }
  0x19   : > { %380 = vmatpush1.bf16.msra.mxu0 %v751_v5  ;;  %712 = vmatpush3.bf16.msra.mxu1 %v763_v12 }
  0x1a   : > { %381 = vmatprep.subr.bf16.mxu0 %v776_v1  ;;  %713 = vmatprep.subr.bf16.mxu1 %v777_v4 }
  0x1d   : > { %382 = vmatpush1.bf16.msra.mxu0 %v752_v9  ;;  %714 = vmatpush3.bf16.msra.mxu1 %v764_v14 }
  0x1e   : > { %383 = vmatprep.subr.bf16.mxu0 %v776_v1  ;;  %715 = vmatprep.subr.bf16.mxu1 %v777_v4 }
  0x21   : > { %384 = vmatpush1.bf16.msra.mxu0 %v753_v11  ;;  %716 = vmatpush3.bf16.msra.mxu1 %v765_v18 }
  0x22   : > { %385 = vmatprep.subr.bf16.mxu0 %v776_v1  ;;  %717 = vmatprep.subr.bf16.mxu1 %v777_v4 }
  0x25   : > { %386 = vmatpush1.bf16.msra.mxu0 %v754_v13  ;;  %718 = vmatpush3.bf16.msra.mxu1 %v766_v19 }
  0x26   : > { %387 = vmatprep.subr.bf16.mxu0 %v776_v1  ;;  %719 = vmatprep.subr.bf16.mxu1 %v777_v4 }
  0x29   : > { %388 = vmatpush1.bf16.msra.mxu0 %v755_v15  ;;  %720 = vmatpush3.bf16.msra.mxu1 %v767_v20 }
  0x2a   : > { %403 = vmatprep.subr.bf16.mxu0 %v776_v1 }
  0x2d   : > { %404 = vmatpush2.bf16.msra.mxu0 %v756_v16 }
  0x30   : > { %406 = vmatmul.mubr.bf16.vlgmr.msra.gmra.mxu0 %v757_v17 }
  0xf0   : > { %v407_v22 = vpop.f32.mrf.mxu0 }
  0xf1   : > { %v421_v23 = vmul.f32 %v679_v21, %v407_v22 }
  0xf2   : > { %v409_v25 = vpop.f32.mrf.mxu0 }
  0xf3   : > { %v430_v27 = vadd.f32 %v680_v24, %v421_v23 }
  0xf4   : > { %v410_v26 = vpop.f32.mrf.mxu0 }
  0xf5   : > { %v422_v28 = vmul.f32 %v679_v21, %v410_v26  ;;  %v432_v31 = vmax.f32 %v430_v27, 0.0 }
  0xf6   : > { %v412_v29 = vpop.f32.mrf.mxu0 }
  0xf7   : > { %v431_v30 = vadd.f32 %v680_v24, %v422_v28 }
  0xf9   : > { %v433_v32 = vmax.f32 %v431_v30, 0.0 }
  0xfb   : > { %v738_v33 = vpack.i.bf16 %v433_v32, %v432_v31  ;;  %v454_v34 = vpack.c.bf16 %v433_v32, %v432_v31 }
  0xfd   : > { %739 = vrot.lane.b32.xlu0 %v738_v33, %s779_s26  ;;  %722 = vmatmul.mubr.bf16.vlgmr.msra.gmra.mxu1 %v454_v34 }
 0x16f   : > { %v740_v35 = vpop.permute.xlu0 %739 }
 0x170   : > { %v742_v36 = vunpack.i.h.bf16 %v740_v35  ;;  %v741_v37 = vunpack.i.l.bf16 %v740_v35 }
 0x172   : > { %v443_v38 = vmax.f32 %v433_v32, %v742_v36  ;;  %v442_v39 = vmax.f32 %v432_v31, %v741_v37 }
 0x174   : > { %v743_v40 = vpack.i.bf16 %v443_v38, %v442_v39 }
 0x176   : > { %744 = vrot.lane.b32.xlu0 %v743_v40, %s780_s27 }
 0x1bd   : > { %v553_v42 = vpop.f32.mrf.mxu1 }
 0x1be   : > { %v567_v43 = vmul.f32 %v689_v41, %v553_v42 }
 0x1bf   : > { %v723_v45 = vpop.f32.mrf.mxu1 }
 0x1c0   : > { %v576_v47 = vadd.f32 %v690_v44, %v567_v43 }
 0x1c1   : > { %v556_v46 = vpop.f32.mrf.mxu1 }
 0x1c2   : > { %v568_v48 = vmul.f32 %v689_v41, %v556_v46  ;;  %v578_v51 = vmax.f32 %v576_v47, 0.0 }
 0x1c3   : > { %v724_v49 = vpop.f32.mrf.mxu1 }
 0x1c4   : > { %v577_v50 = vadd.f32 %v690_v44, %v568_v48 }
 0x1c6   : > { %v579_v52 = vmax.f32 %v577_v50, 0.0 }
 0x1c8   : > { %v580_v53 = vpack.c.bf16 %v579_v52, %v578_v51 }
 0x1e8   : > { %v745_v54 = vpop.permute.xlu0 %744 }
 0x1e9   : > { %v747_v55 = vunpack.i.h.bf16 %v745_v54  ;;  %v746_v56 = vunpack.i.l.bf16 %v745_v54 }
 0x1eb   : > { %v453_v57 = vmax.f32 %v443_v38, %v747_v55  ;;  %v452_v58 = vmax.f32 %v442_v39, %v746_v56 }
 0x1ed   : > { %v581_v59 = vpack.c.bf16 %v453_v57, %v452_v58 }
 0x1ef   : > { %583 = vrot.lane.b32.xlu1 %v581_v59, %s780_s27 }
 0x261   : > { %v584_v60 = vpop.permute.xlu1 %583 }
 0x262   : > { %v588_v61 = vsel %vm585_vm2, %v580_v53, %v584_v60 }
 0x263   : > { %v591_v62 = vsel %vm589_vm3, %v588_v61, 0 }
 0x264   : > { %v691_v63 = vcombine.low %v591_v62, %v591_v62  ;;  %v692_v0 = vcombine.high %v591_v62, %v591_v62 }
 0x266   : > { %599 = vst [vmem:[%s283_s14] sm:$0xf] %v691_v63  ;;  %600 = vst [vmem:[%s283_s14 + $0x4] sm:$0xf] %v692_v0 }
 0x267 PF: > { %s17_s24 = sadd.s32 1, %s774_s24  }
 0x268   : > { %p14_p4 = scmp.ge.s32.totalorder %s17_s24, 4  }
 0x26a   :  { %16 = sbr.rel (!%p14_p4) target bundleno = 1 (0x1), region = 78 }

// kernel: stem_block_forward.3
= control target key start
LH: loop header
LB: loop body
LE: loop exit
PB: predicated region body
PF: predicated region fallthrough
CT: control target
= control target key end

     0   :  { %s1198_s27 = smov 0   ;;  %s1200_s28 = smov 0   ;;  %s1391_s0 = inlined_call_operand.vmem [shape: bf16[32,128], index: 0, kind: input, shape index: {}, may-alias: {0,1}]   ;;  %s1392_s1 = inlined_call_operand.vmem [shape: bf16[8,4,128], index: 1, kind: input, shape index: {}, may-alias: {0,1}]   ;;  %s1393_s2 = inlined_call_operand.vmem [shape: bf16[256,32], index: 2, kind: input, shape index: {}]   ;;  %s1394_s3 = inlined_call_operand.vmem [shape: f32[1,32], index: 3, kind: input, shape index: {}]   ;;  %s1395_s4 = inlined_call_operand.vmem [shape: f32[1,32], index: 4, kind: input, shape index: {}]   ;;  %s1396_s5 = inlined_call_operand.vmem [shape: bf16[64,32], index: 5, kind: input, shape index: {}]   ;;  %s1397_s6 = inlined_call_operand.vmem [shape: f32[1,32], index: 6, kind: input, shape index: {}]   ;;  %s1398_s7 = inlined_call_operand.vmem [shape: f32[1,32], index: 7, kind: input, shape index: {}]   ;;  %s1399_s8 = inlined_call_operand.vmem [shape: bf16[32,32], index: 8, kind: output, shape index: {}]  }
   0x1   :  { %s1202_s29 = smov 0  }
   0x2 LB: > { %s30_s30 = sadd.s32 1, %s1140_s28  ;;  %p978_p0 = scmp.ge.s32.totalorder %s1144_s29, 1  ;;  %s1144_s29 = sphi %s1202_s29, %s18_s29   ;;  %s1140_s28 = sphi %s1200_s28, %s1411_s28   ;;  %s1136_s27 = sphi %s1198_s27, %s1410_s27  }
   0x3   : > { %p32_p1 = scmp.ge.s32.totalorder %s30_s30, 2  ;;  %p314_p2 = scmp.lt.s32.totalorder %s1144_s29, 3 }
   0x5   : > { %s1413_s30 = smov (%p32_p1, %s30_s30), 0  ;;  %p315_p3 = pnand %p978_p0, %p314_p2 }
   0x6   : > { %s979_s9 = sshll.u32 (!%p315_p3), %s1136_s27, 1  ;;  %s981_s10 = sshll.u32 (!%p315_p3), %s1136_s27, 2 }
   0x7   : > { %318 = sbr.rel (%p315_p3) target bundleno = 704 (0x2c0), region = 52  ;;  %p362_p4 = scmp.lt.s32.totalorder (!%p315_p3), %s979_s9, 3 }
   0x8   : > { %s982_s11 = sadd.s32 (!%p315_p3), 4294967295, %s981_s10  ;;  %s1149_s17 = smov (!%p315_p3), 64  }
   0x9   : > { %p372_p5 = scmp.gt.s32.totalorder (!%p315_p3), %s982_s11, 0  ;;  %p983_p6 = scmp.lt.s32.totalorder (!%p315_p3), %s982_s11, 7 }
   0xc   : > { %vm406_vm0 = vcmask 516096   ;;  %vm407_vm1 = vsmask.f32 256  ;;  %v416_v0 = vlaneseq  ;;  %v1146_v1 = vmov 1   ;;  %v409_v3 = vld [vmem:[#allocation2] sm:$0x1] }
   0xd   : > { %v403_v2 = vpack.c.b16 %v1146_v1, %v1146_v1  ;;  %vm408_vm2 = vmand %vm406_vm0, %vm407_vm1  ;;  %v1147_v5 = vmov 1983009808   ;;  %v1102_v7 = vld [vmem:[%s1393_s2 + $0x78] sm:$0xff]   ;;  %s1415_s9 = smov (!%p362_p4, %s979_s9), 3  ;;  %vm428_vm4 = vcmask 518144   ;;  %vm465_vm8 = vcmask 519168  }
   0xe   : > { %v410_v4 = vsel %vm408_vm2, 0, %v409_v3  ;;  %v414_v6 = vunpack.c.l.s4 %v1147_v5  ;;  %v417_v8 = vshrl.u32 %v416_v0, 7  ;;  %s373_s14 = scalar_select %p372_p5, %s982_s11, 0  ;;  %vm429_vm5 = vsmask.f32 2306  ;;  %1030 = vmatprep.subr.bf16.mxu0 %v1102_v7  ;;  %v1103_v23 = vld [vmem:[%s1393_s2 + $0x38] sm:$0xff]  }
   0xf   : > { %411 = vst [vmem:[#allocation2] sm:$0x1] %v410_v4  ;;  %vm404_vm3 = vcmp.ne.s16.totalorder %v403_v2, 0  ;;  %s980_s15 = sshll.u32 %s1415_s9, 2  ;;  %vm434_vm6 = vsmask.f32 2304  ;;  %1031 = vmatpush3.bf16.msra.mxu0 %v1103_v23  ;;  %vm1290_vm2 = vmand %vm428_vm4, %vm429_vm5 }
  0x10   : > { %v415_v9 = vunpack.c.0.s8 %v414_v6  ;;  %v478_v10 = vadd.s32 8, %v417_v8  ;;  %v483_v11 = vand.u32 3, %v417_v8  ;;  %s365_s18 = scalar_lea.vmem %s1391_s0, %s980_s15  ;;  %vm435_vm7 = vsmask.f32 6416  ;;  %s1417_s14 = smov (!%p983_p6, %s373_s14), 7  ;;  %vm1271_vm0 = vmand %vm428_vm4, %vm434_vm6  ;;  %v1104_v40 = vld [vmem:[%s1393_s2 + $0x70] sm:$0xff]  }
  0x11   : > { %v1228_v12 = vld [vmem:[%s365_s18] sm:$0xf]  ;;  %v1230_v13 = vld [vmem:[%s365_s18 + $0x4] sm:$0xf]  ;;  %s988_s19 = sshll.u32 %s1417_s14, 1  ;;  %vm1237_vm9 = vmor %vm434_vm6, %vm435_vm7  ;;  %vm513_vm12 = vcmask 1041408   ;;  %1032 = vmatprep.subr.bf16.mxu0 %v1104_v40  ;;  %s389_s22 = scalar_lea.vmem %s1399_s8, %s980_s15 }
  0x12   : > { %v490_v14 = vand.u32 3, %v478_v10  ;;  %v438_v15 = vshrl.u32 %v1228_v12, 16  ;;  %v441_v16 = vshll.u32 %v1228_v12, 16  ;;  %v447_v17 = vshrl.u32 %v1230_v13, 16  ;;  %s377_s24 = scalar_lea.vmem %s1392_s1, %s988_s19  ;;  %v468_v29 = vld [vmem:[#allocation2 + $0x8] sm:$0x7] }
  0x13   : > { %v450_v18 = vshll.u32 %v1230_v13, 16  ;;  %v418_v19 = vsub.s32 %v415_v9, %v417_v8  ;;  %vm1241_vm10 = vcmp.eq.s32.totalorder %v483_v11, 0  ;;  %v397_v28 = vld [vmem:[%s377_s24] sm:$0x3]  ;;  %v1148_v30 = vmov 0   ;;  %v1105_v41 = vld [vmem:[%s1393_s2 + $0x30] sm:$0xff]  }
  0x14   : > { %vm1245_vm11 = vcmp.eq.s32.totalorder %v490_v14, 0  ;;  %v440_v24 = vrot.slane %v438_v15, 5  ;;  %v443_v25 = vrot.slane %v441_v16, 6  ;;  %v449_v26 = vrot.slane %v447_v17, 5  ;;  %vm509_vm13 = vmpackc.low %vm1241_vm10, %vm1241_vm10  ;;  %1033 = vmatpush3.bf16.msra.mxu0 %v1105_v41  ;;  %v1106_v50 = vld [vmem:[%s1393_s2 + $0x68] sm:$0xff]   ;;  %v1108_v54 = vld [vmem:[%s1393_s2 + $0x60] sm:$0xff]  }
  0x15   : > { %v452_v27 = vrot.slane %v450_v18, 6  ;;  %vm510_vm14 = vmpackc.low %vm1245_vm11, %vm1245_vm11  ;;  %v1266_v31 = vsel %vm509_vm13, 65537, %v1148_v30  ;;  %vm514_vm15 = vcmask 1045508   ;;  %v405_v32 = vsel %vm404_vm3, 0, %v397_v28  ;;  %v1107_v53 = vld [vmem:[%s1393_s2 + $0x28] sm:$0xff]   ;;  %1034 = vmatprep.subr.bf16.mxu0 %v1106_v50  ;;  %v1109_v57 = vld [vmem:[%s1393_s2 + $0x20] sm:$0xff]  }
  0x16   : > { %v444_v33 = vor.u32 %v443_v25, %v440_v24  ;;  %v512_v36 = vsel %vm510_vm14, 65537, %v1148_v30  ;;  %v419_v37 = vrot.slane %v405_v32, %v418_v19  ;;  %v516_v38 = vrot.slane %v1266_v31, 6  ;;  %vm515_vm1 = vmor %vm513_vm12, %vm514_vm15  ;;  %v431_v55 = vld [vmem:[#allocation2] sm:$0x7]  ;;  %v1110_v59 = vld [vmem:[%s1393_s2 + $0x58] sm:$0xff]   ;;  %s1152_s14 = smov 32  }
  0x17   : > { %v453_v34 = vor.u32 %v452_v27, %v449_v26  ;;  %v518_v39 = vrot.slane %v512_v36, 6  ;;  %vm460_vm3 = vsmask.f32 7946  ;;  %vm459_vm5 = vcmask 519170   ;;  %v1111_v60 = vld [vmem:[%s1393_s2 + $0x18] sm:$0xff]   ;;  %v1112_v0 = vld [vmem:[%s1393_s2 + $0x50] sm:$0xff]  }
  0x18   : > { %v445_v42 = vrot.slane %v444_v33, 4  ;;  %v421_v44 = vshrl.u32 %v419_v37, 16  ;;  %v424_v45 = vshll.u32 %v419_v37, 16  ;;  %v517_v47 = vrot.slane %v516_v38, 4  ;;  %1035 = vmatpush3.bf16.msra.mxu0 %v1107_v53  ;;  %vm461_vm6 = vmand %vm459_vm5, %vm460_vm3  ;;  %v1113_v1 = vld [vmem:[%s1393_s2 + $0x10] sm:$0xff]   ;;  %v1114_v3 = vld [vmem:[%s1393_s2 + $0x48] sm:$0xff]  }
  0x19   : > { %v455_v43 = vrot.slane %v453_v34, 4  ;;  %1036 = vmatprep.subr.bf16.mxu0 %v1108_v54  ;;  %v520_v62 = vrot.slane %v518_v39, 4  ;;  %v1115_v6 = vld [vmem:[%s1393_s2 + $0x8] sm:$0xff]   ;;  %v1116_v7 = vld [vmem:[%s1393_s2 + $0x40] sm:$0xff]   ;;  %v991_v9 = vcombine.low %v1228_v12, %v1230_v13  ;;  %vm542_vm11 = vsmask.f32 7424 }
  0x1a   : > { %v454_v48 = vsel %vm1237_vm9, %v445_v42, %v453_v34  ;;  %v423_v51 = vrot.slane %v421_v44, 7  ;;  %v519_v52 = vsel %vm515_vm1, %v517_v47, %v518_v39  ;;  %v1117_v14 = vld [vmem:[%s1393_s2] sm:$0xff]   ;;  %vm565_vm9 = vcmask 1045504   ;;  %v1118_v35 = vld [vmem:[%s1396_s5 + $0x18] sm:$0xff]   ;;  %v1119_v37 = vld [vmem:[%s1396_s5 + $0x10] sm:$0xff]  }
  0x1b   : > { %v469_v49 = vsel %vm1271_vm0, %v455_v43, %v468_v29  ;;  %466 = vst.msk [vmem:[#allocation2 + $0x4] sm:$0xf] %vm465_vm8, %v454_v48  ;;  %vm522_vm4 = vcmp.ne.s16.totalorder %v519_v52, 0  ;;  %vm523_vm7 = vcmp.ne.s16.totalorder %v520_v62, 0  ;;  %775 = vrot.lane.b32.xlu1 %v991_v9, %s1149_s17  ;;  %vm521_vm8 = vcmp.ne.s16.totalorder %v516_v38, 0  ;;  %v1120_v38 = vld [vmem:[%s1396_s5 + $0x8] sm:$0xff]  }
  0x1c   : > { %470 = vst [vmem:[#allocation2 + $0x8] sm:$0x7] %v469_v49  ;;  %v426_v56 = vor.u32 %v424_v45, %v423_v51  ;;  %1037 = vmatpush3.bf16.msra.mxu0 %v1109_v57  ;;  %vm576_vm10 = vcmask 523264   ;;  %v1150_v36 = vmov 0.0   ;;  %v1121_v39 = vld [vmem:[%s1396_s5] sm:$0xff]   ;;  %vm1151_vm12 = vmmov 0  }
  0x1d   : > { %1038 = vmatprep.subr.bf16.mxu0 %v1110_v59  ;;  %1057 = vmatprep.subr.bf16.mxu1 %v1150_v36  ;;  %v1013_v42 = vld [vmem:[%s1394_s3] ss:$0 sm:$0xff] }
  0x1e   : > { %v432_v58 = vsel %vm1290_vm2, %v426_v56, %v431_v55  ;;  %1058 = vmatpush3.bf16.msra.mxu1 %v1118_v35  ;;  %1065 = vmatprep.mubr.msk.bf16.mxu1 %vm1151_vm12, %v1150_v36  ;;  %v1014_v46 = vld [vmem:[%s1395_s4] ss:$0 sm:$0xff] }
  0x1f   : > { %433 = vst [vmem:[#allocation2] sm:$0x7] %v432_v58  ;;  %1059 = vmatprep.subr.bf16.mxu1 %v1150_v36  ;;  %v1020_v58 = vld [vmem:[%s1397_s6] ss:$0 sm:$0xff] }
  0x20   : > { %1039 = vmatpush3.bf16.msra.mxu0 %v1111_v60  ;;  %v1021_v60 = vld [vmem:[%s1398_s7] ss:$0 sm:$0xff] }
  0x21   : > { %1040 = vmatprep.subr.bf16.mxu0 %v1112_v0 }
  0x22   : > { %v472_v61 = vld [vmem:[#allocation2 + $0x4] sm:$0xf]  ;;  %1060 = vmatpush3.bf16.msra.mxu1 %v1119_v37 }
  0x23   : > { %v525_v63 = vsel %vm522_vm4, 0, %v472_v61  ;;  %v475_v5 = vld [vmem:[#allocation2 + $0x8] sm:$0x3]  ;;  %v528_v15 = vsel %vm510_vm14, 0, %v472_v61  ;;  %1061 = vmatprep.subr.bf16.mxu1 %v1150_v36  ;;  %vm887_vm14 = vcmask 257024  }
  0x24   : > { %1041 = vmatpush3.bf16.msra.mxu0 %v1113_v1  ;;  %v526_v8 = vsel %vm523_vm7, 0, %v475_v5  ;;  %v1101_v10 = vld [vmem:[#allocation2 + $0x8] ss:$0 sps:$4 sm:$0x11]  }
  0x25   : > { %1042 = vmatprep.subr.bf16.mxu0 %v1114_v3  ;;  %v995_v11 = vcombine.low %v526_v8, %v526_v8  ;;  %v551_v19 = vshll.u32 %v1101_v10, 16 }
  0x26   : > { %v462_v2 = vld [vmem:[#allocation2] sm:$0xc]  ;;  %1062 = vmatpush3.bf16.msra.mxu1 %v1120_v38 }
  0x27   : > { %v463_v4 = vsel %vm461_vm6, %v444_v33, %v462_v2  ;;  %v567_v24 = vrot.slane %v995_v11, 2  ;;  %v553_v28 = vrot.slane %v551_v19, 1  ;;  %1063 = vmatprep.subr.bf16.mxu1 %v1150_v36 }
  0x28   : > { %464 = vst [vmem:[#allocation2] sm:$0xc] %v463_v4  ;;  %1043 = vmatpush3.bf16.msra.mxu0 %v1115_v6 }
  0x29   : > { %1044 = vmatprep.subr.bf16.mxu0 %v1116_v7 }
  0x2a   : > { %1064 = vmatpush3.bf16.msra.mxu1 %v1121_v39 }
  0x2c   : > { %1045 = vmatpush3.bf16.msra.mxu0 %v1117_v14 }
  0x2f   : > { %v471_v16 = vld [vmem:[#allocation2] sm:$0xf] }
  0x30   : > { %v474_v17 = vld [vmem:[#allocation2] sm:$0xc]  ;;  %v527_v13 = vsel %vm509_vm13, 0, %v471_v16  ;;  %v992_v18 = vcombine.low %v471_v16, %v472_v61  ;;  %vm780_vm13 = vcmask 261120  }
  0x31   : > { %v524_v12 = vsel %vm521_vm8, 0, %v474_v17  ;;  %v996_v20 = vcombine.low %v527_v13, %v528_v15 }
  0x32   : > { %v994_v23 = vcombine.low %v524_v12, %v525_v63  ;;  %v544_v25 = vshrl.u32 %v992_v18, 16  ;;  %v546_v22 = vshll.u32 %v992_v18, 16 }
  0x33   : > { %574 = vrot.lane.b32.xlu0 %v996_v20, %s1149_s17 }
  0x34   : > { %v566_v26 = vrot.slane %v994_v23, 2  ;;  %v548_v27 = vrot.slane %v546_v22, 1 }
  0x36   : > { %v568_v29 = vsel %vm565_vm9, %v566_v26, %v567_v24  ;;  %v549_v30 = vor.u32 %v548_v27, %v544_v25 }
  0x38   : > { %v554_v31 = vsel %vm542_vm11, %v549_v30, %v553_v28 }
  0x39   : > { %555 = vrot.lane.b32.xlu0 %v554_v31, %s1149_s17 }
  0x8d   : > { %v776_v55 = vpop.permute.xlu1 %775 }
  0xa5   : > { %v575_v21 = vpop.permute.xlu0 %574 }
  0xa6   : > { %v583_v32 = vsel %vm576_vm10, %v568_v29, %v575_v21 }
  0xa7   : > { %745 = vmatprep.mubr.bf16.mxu0 %v583_v32 }
  0xab   : > { %v556_v33 = vpop.permute.xlu0 %555 }
  0xac   : > { %v579_v34 = vsel %vm576_vm10, %v991_v9, %v556_v33 }
  0xad   : > { %746 = vmatmul.mubr.bf16.vlgmr.msra.gmra.mxu0 %v579_v34 }
 0x16d   : > { %v1046_v40 = vpop.f32.mrf.mxu0 }
 0x16f   : > { %v1047_v41 = vpop.f32.mrf.mxu0 }
 0x170   : > { %v1048_v43 = vadd.f32 %v1047_v41, %v1046_v40 }
 0x171   : > { %v1049_v44 = vpop.f32.mrf.mxu0 }
 0x172   : > { %v761_v45 = vmul.f32 %v1048_v43, %v1013_v42 }
 0x173   : > { %v1050_v47 = vpop.f32.mrf.mxu0 }
 0x174   : > { %v1051_v48 = vadd.f32 %v1050_v47, %v1049_v44  ;;  %v770_v49 = vadd.f32 %v1014_v46, %v761_v45 }
 0x176   : > { %v762_v50 = vmul.f32 %v1051_v48, %v1013_v42  ;;  %v772_v52 = vmax.f32 %v770_v49, 0.0 }
 0x178   : > { %v771_v51 = vadd.f32 %v1014_v46, %v762_v50 }
 0x17a   : > { %v773_v53 = vmax.f32 %v771_v51, 0.0 }
 0x17c   : > { %v774_v54 = vpack.c.bf16 %v773_v53, %v772_v52 }
 0x17e   : > { %778 = vrot.lane.b32.xlu1 %v774_v54, %s1152_s14 }
 0x1f0   : > { %v779_v56 = vpop.permute.xlu1 %778 }
 0x1f1   : > { %v783_v57 = vsel %vm780_vm13, %v776_v55, %v779_v56 }
 0x1f2   : > { %1066 = vmatmul.mubr.msk.bf16.vlgmr.msra.gmra.mxu1 %vm576_vm10, %v783_v57 }
 0x2b2   : > { %v852_v59 = vpop.f32.mrf.mxu1 }
 0x2b3   : > { %v866_v61 = vmul.f32 %v1020_v58, %v852_v59 }
 0x2b4   : > { %v1067_v62 = vpop.f32.mrf.mxu1 }
 0x2b5   : > { %v875_v63 = vadd.f32 %v1021_v60, %v866_v61 }
 0x2b6   : > { %v855_v0 = vpop.f32.mrf.mxu1 }
 0x2b7   : > { %v877_v1 = vmax.f32 %v875_v63, 0.0  ;;  %v867_v2 = vmul.f32 %v1020_v58, %v855_v0 }
 0x2b8   : > { %v1068_v3 = vpop.f32.mrf.mxu1 }
 0x2b9   : > { %v1028_v4 = vpack.c.bf16 %v877_v1, %v877_v1  ;;  %v876_v5 = vadd.f32 %v1021_v60, %v867_v2 }
 0x2bb   : > { %888 = vst.msk [vmem:[%s389_s22] sm:$0xf] %vm887_vm14, %v1028_v4  ;;  %v878_v6 = vmax.f32 %v876_v5, 0.0 }
 0x2bd   : > { %v1029_v7 = vpack.c.bf16 %v878_v6, %v878_v6 }
 0x2bf   : > { %889 = vst.msk [vmem:[%s389_s22 + $0x4] sm:$0xf] %vm887_vm14, %v1029_v7 }
 0x2c0 PF: > { %s18_s29 = sadd.s32 1, %s1144_s29   ;;  %s1410_s27 = smov %s1140_s28 }
 0x2c1   : > { %p15_p7 = scmp.ge.s32.totalorder %s18_s29, 4   ;;  %s1411_s28 = smov %s1413_s30 }
 0x2c3   :  { %17 = sbr.rel (!%p15_p7) target bundleno = 2 (0x2), region = 85 }

</bundles_post_ra>
